<compile_context>
chip_gen: v6e
topology: v6e:2x2x1
jax: 0.10.0
libtpu: 0.0.40
codegen_flags: <defaults>
</compile_context>

<pallas_src>
import functools

import jax
import jax.numpy as jnp
from jax.experimental import pallas as pl
from jax.experimental.pallas import tpu as pltpu

LANES = 128
SUBLANES = 8
MAX_TILE_ROWS = 2048                  # (2048, 128) f32 = 1 MiB per input per buffer
VMEM_LIMIT_BYTES = 32 * 1024 * 1024   # explicit scoped-VMEM budget, safe on v5e/v6e/v7x


def _round_up(x, m):
    return (x + m - 1) // m * m


def _dice_partial_kernel(p_ref, t_ref, out_ref, *, tile_rows, rows, need_mask):
    """Per-tile partial reduction.

    out_ref block is (1, 8, 128):
      row 0 -> per-lane partial of sum(p * t)
      row 1 -> per-lane partial of sum(p) + sum(t)   (fused as sum(p + t))
      rows 2..7 -> zeros (keeps the output tile (8, 128)-aligned / lane-dense).
    """
    p = p_ref[...].astype(jnp.float32)
    t = t_ref[...].astype(jnp.float32)

    if need_mask:
        # The last tile sticks out past the real row count; zero the invalid rows
        # (jnp.where so any garbage/NaN in the out-of-bounds region cannot leak in).
        i = pl.program_id(0)
        row = jax.lax.broadcasted_iota(jnp.int32, (tile_rows, LANES), 0)
        valid = (i * tile_rows + row) < rows
        p = jnp.where(valid, p, 0.0)
        t = jnp.where(valid, t, 0.0)

    inter_l = jnp.sum(p * t, axis=0, keepdims=True)   # (1, 128) per-lane partial
    sum_l = jnp.sum(p + t, axis=0, keepdims=True)     # (1, 128) per-lane partial
    pad = jnp.zeros((SUBLANES - 2, LANES), jnp.float32)
    out_ref[...] = jnp.concatenate([inter_l, sum_l, pad], axis=0)[None]


def dice_loss(seg_pred, seg_truth, smooth=1.0):
    p = jnp.reshape(seg_pred, (-1,))
    t = jnp.reshape(seg_truth, (-1,))
    n = p.shape[0]

    # Pad only if the flattened size is not a multiple of the lane width (rare for
    # segmentation maps); zeros do not change any of the sums.  No dtype cast here:
    # inputs stay in their natural dtype and are upcast per-tile inside the kernel.
    if n % LANES != 0:
        extra = LANES - n % LANES
        p = jnp.pad(p, (0, extra))
        t = jnp.pad(t, (0, extra))

    rows = p.shape[0] // LANES
    p2 = p.reshape(rows, LANES)
    t2 = t.reshape(rows, LANES)

    tile_rows = min(MAX_TILE_ROWS, _round_up(rows, SUBLANES))
    n_steps = (rows + tile_rows - 1) // tile_rows
    need_mask = (rows % tile_rows) != 0

    kernel = functools.partial(
        _dice_partial_kernel, tile_rows=tile_rows, rows=rows, need_mask=need_mask
    )

    partials = pl.pallas_call(
        kernel,
        out_shape=jax.ShapeDtypeStruct((n_steps, SUBLANES, LANES), jnp.float32),
        grid_spec=pltpu.PrefetchScalarGridSpec(
            num_scalar_prefetch=0,
            grid=(n_steps,),
            in_specs=[
                pl.BlockSpec((tile_rows, LANES), lambda i: (i, 0)),
                pl.BlockSpec((tile_rows, LANES), lambda i: (i, 0)),
            ],
            out_specs=pl.BlockSpec((1, SUBLANES, LANES), lambda i: (i, 0, 0)),
        ),
        compiler_params=pltpu.CompilerParams(
            dimension_semantics=("parallel",),
            vmem_limit_bytes=VMEM_LIMIT_BYTES,
        ),
    )(p2, t2)

    # Tiny final combine (a few KiB of partials) + smooth term in plain JAX.
    intersection = jnp.sum(partials[:, 0, :])
    total = jnp.sum(partials[:, 1, :])
    score = (2.0 * intersection + smooth) / (total + smooth)
    return 1.0 - score


if __name__ == "__main__":
    key = jax.random.PRNGKey(0)
    k1, k2 = jax.random.split(key)
    # shapes consistent with a segmentation prediction / truth pair (NCHW)
    seg_pred = jax.nn.sigmoid(jax.random.normal(k1, (2, 4, 16, 16), dtype=jnp.float32))
    seg_truth = (jax.random.uniform(k2, (2, 4, 16, 16)) > 0.5).astype(jnp.float32)

    loss = dice_loss(seg_pred, seg_truth)
    jax.block_until_ready(loss)

    # reference check in plain JAX
    pf = seg_pred.reshape(-1)
    tf = seg_truth.reshape(-1)
    inter = jnp.sum(pf * tf)
    ref = 1.0 - (2.0 * inter + 1.0) / (jnp.sum(pf) + jnp.sum(tf) + 1.0)
    assert jnp.allclose(loss, ref, rtol=1e-5, atol=1e-6), (loss, ref)

    print("KERNEL_OK")
</pallas_src>

<mosaic_0001>
module attributes {stable_mosaic.version = 11 : i64} {
  func.func @_dice_partial_kernel(%arg0: i32, %arg1: memref<16x128xf32, #tpu.memory_space<vmem>>, %arg2: memref<16x128xf32, #tpu.memory_space<vmem>>, %arg3: memref<1x8x128xf32, #tpu.memory_space<vmem>>) attributes {dimension_semantics = [#tpu.dimension_semantics<parallel>], iteration_bounds = array<i64: 1>, scalar_prefetch = 0 : i64, scratch_operands = 0 : i64, tpu.core_type = #tpu.core_type<tc>, window_params = [{transform_indices = @transform_0, window_bounds = array<i64: 16, 128>}, {transform_indices = @transform_1, window_bounds = array<i64: 16, 128>}, {transform_indices = @transform_2, window_bounds = array<i64: 1, 8, 128>}]} {
    %c0 = arith.constant 0 : index
    %c0_0 = arith.constant 0 : index
    %0 = vector.load %arg1[%c0, %c0_0] : memref<16x128xf32, #tpu.memory_space<vmem>>, vector<16x128xf32>
    %c0_1 = arith.constant 0 : index
    %c0_2 = arith.constant 0 : index
    %1 = vector.load %arg2[%c0_1, %c0_2] : memref<16x128xf32, #tpu.memory_space<vmem>>, vector<16x128xf32>
    %2 = arith.mulf %0, %1 : vector<16x128xf32>
    %cst = arith.constant dense<0.000000e+00> : vector<128xf32>
    %3 = vector.multi_reduction <add>, %2, %cst [0] : vector<16x128xf32> to vector<128xf32>
    %4 = vector.shape_cast %3 : vector<128xf32> to vector<1x128xf32>
    %5 = arith.addf %0, %1 : vector<16x128xf32>
    %cst_3 = arith.constant dense<0.000000e+00> : vector<128xf32>
    %6 = vector.multi_reduction <add>, %5, %cst_3 [0] : vector<16x128xf32> to vector<128xf32>
    %7 = vector.shape_cast %6 : vector<128xf32> to vector<1x128xf32>
    %cst_4 = arith.constant 0.000000e+00 : f32
    %8 = vector.broadcast %cst_4 : f32 to vector<6x128xf32>
    %9 = tpu.concatenate %4, %7, %8 in 0 : vector<1x128xf32>, vector<1x128xf32>, vector<6x128xf32> -> vector<8x128xf32>
    %10 = vector.shape_cast %9 : vector<8x128xf32> to vector<1x8x128xf32>
    %c0_5 = arith.constant 0 : index
    %c0_6 = arith.constant 0 : index
    %c0_7 = arith.constant 0 : index
    %11 = vector.load %arg3[%c0_5, %c0_6, %c0_7] : memref<1x8x128xf32, #tpu.memory_space<vmem>>, vector<1x8x128xf32>
    tpu.vector_store %arg3[%c0_5, %c0_6, %c0_7], %10 {strides = array<i32>} : memref<1x8x128xf32, #tpu.memory_space<vmem>>, vector<1x8x128xf32>,
    return
  }
  func.func @transform_0(%arg0: i32) -> (i32, i32) {
    %c0_i32 = arith.constant 0 : i32
    %c0_i32_0 = arith.constant 0 : i32
    return %arg0, %c0_i32 : i32, i32
  }
  func.func @transform_1(%arg0: i32) -> (i32, i32) {
    %c0_i32 = arith.constant 0 : i32
    %c0_i32_0 = arith.constant 0 : i32
    return %arg0, %c0_i32 : i32, i32
  }
  func.func @transform_2(%arg0: i32) -> (i32, i32, i32) {
    %c0_i32 = arith.constant 0 : i32
    %c0_i32_0 = arith.constant 0 : i32
    %c0_i32_1 = arith.constant 0 : i32
    return %arg0, %c0_i32, %c0_i32_0 : i32, i32, i32
  }
}

</mosaic_0001>

<bundles_post_ra>
// kernel: tpu_custom_call.1
= control target key start
LH: loop header
LB: loop body
LE: loop exit
PB: predicated region body
PF: predicated region fallthrough
CT: control target
= control target key end

     0   :  { %7 = vsyncpa [#allocation3], 0  ;;  %s183_s0 = inlined_call_operand.hbm [shape: f32[16,128], index: 0, kind: input, shape index: {}]   ;;  %s184_s1 = inlined_call_operand.hbm [shape: f32[16,128], index: 1, kind: input, shape index: {}]   ;;  %s185_s2 = inlined_call_operand.hbm [shape: f32[1,8,128], index: 2, kind: output, shape index: {}]  }
   0x1   :  { %8 = vsyncpa [#allocation6], 0 }
   0x2   :  { %9 = vsyncpa [#allocation4], 0  ;;  %s154_s9 = smov [#allocation2]  }
   0x3   :  { %s15_s10 = sshll.u32 %s154_s9, 4  ;;  %s16_s10 = int_to_ptr.vmem [resolvable:$true] %s15_s10 }
   0x4   :  { %s96_s11 = scalar_lea.vmem %s16_s10, 256  ;;  %p101_p1 = scmp.lt.s32.totalorder %s16_s10, %s16_s10 }
   0x5   :  { %p97_p0 = scmp.ne.s32.totalorder %s16_s10, %s96_s11  ;;  %p102_p2 = scmp.lt.s32.totalorder %s96_s11, %s96_s11 }
   0x7   :  { %p103_p3 = por %p102_p2, %p101_p1 }
   0x9   :  { %p104_p4 = pnand %p103_p3, %p97_p0 }
   0xb   :  { %107 = shalt.err (!%p104_p4)
}
   0xc   :  { %s155_s12 = smov 128   ;;  %s156_s13 = smov 8  }
   0xd   :  { %21 = dma.hbm_to_vmem [thread:$0]  %s183_s0, 256, %s16_s10, [#allocation3], %s155_s12, %s155_s12, %s156_s13  }
   0xe   :  { %s157_s16 = smov [#allocation5]  }
   0xf   :  { %s27_s17 = sshll.u32 %s157_s16, 4  ;;  %s28_s17 = int_to_ptr.vmem [resolvable:$true] %s27_s17 }
  0x10   :  { %s116_s18 = scalar_lea.vmem %s28_s17, 256  ;;  %p121_p6 = scmp.lt.s32.totalorder %s28_s17, %s28_s17 }
  0x11   :  { %p117_p5 = scmp.ne.s32.totalorder %s28_s17, %s116_s18  ;;  %p122_p7 = scmp.lt.s32.totalorder %s116_s18, %s116_s18 }
  0x13   :  { %p123_p8 = por %p122_p7, %p121_p6 }
  0x15   :  { %p124_p9 = pnand %p123_p8, %p117_p5 }
  0x17   :  { %127 = shalt.err (!%p124_p9)
}
  0x18   :  { %33 = dma.hbm_to_vmem [thread:$0]  %s184_s1, 256, %s28_s17, [#allocation6], %s155_s12, %s155_s12, %s156_s13  }
  0x19   :  { %148 = dma.done.wait [#allocation3], 256  }
  0x1a   :  { %149 = vsyncadd [#allocation3], 4294967040 }
  0x1b   :  { %150 = dma.done.wait [#allocation6], 256  }
  0x1c   :  { %151 = vsyncadd [#allocation6], 4294967040  ;;  %v40_v0 = vld [vmem:[#allocation2] sm:$0xff]  ;;  %v41_v1 = vld [vmem:[#allocation2 + $0x8] sm:$0xff]  ;;  %vm62_vm0 = vcmask 1040384   ;;  %s158_s0 = smov [#allocation7]  }
  0x1d   :  { %v42_v2 = vld [vmem:[#allocation5] sm:$0xff]  ;;  %v43_v3 = vld [vmem:[#allocation5 + $0x8] sm:$0xff]  ;;  %s73_s1 = sshll.u32 %s158_s0, 4  ;;  %vm64_vm1 = vcmask 1041408   ;;  %s74_s1 = int_to_ptr.vmem [resolvable:$true] %s73_s1 }
  0x1e   :  { %v44_v4 = vmul.f32 %v42_v2, %v40_v0  ;;  %v53_v5 = vadd.f32 %v42_v2, %v40_v0  ;;  %v45_v6 = vmul.f32 %v43_v3, %v41_v1  ;;  %v54_v7 = vadd.f32 %v43_v3, %v41_v1  ;;  %s128_s21 = scalar_lea.vmem %s74_s1, 128  ;;  %p133_p11 = scmp.lt.s32.totalorder %s74_s1, %s74_s1 }
  0x1f   :  { %p129_p10 = scmp.ne.s32.totalorder %s74_s1, %s128_s21  ;;  %p134_p12 = scmp.lt.s32.totalorder %s128_s21, %s128_s21 }
  0x20   :  { %v46_v8 = vadd.f32 %v45_v6, %v44_v4  ;;  %v55_v9 = vadd.f32 %v54_v7, %v53_v5 }
  0x21   :  { %p135_p13 = por %p134_p12, %p133_p11 }
  0x22   :  { %v47_v10 = vrot.slane %v46_v8, 4  ;;  %v56_v11 = vrot.slane %v55_v9, 4 }
  0x23   :  { %p136_p0 = pnand %p135_p13, %p129_p10 }
  0x24   :  { %v48_v12 = vadd.f32 %v47_v10, %v46_v8  ;;  %v57_v13 = vadd.f32 %v56_v11, %v55_v9 }
  0x26   :  { %v49_v14 = vrot.slane %v48_v12, 2  ;;  %v58_v15 = vrot.slane %v57_v13, 2 }
  0x28   :  { %v50_v16 = vadd.f32 %v49_v14, %v48_v12  ;;  %v59_v17 = vadd.f32 %v58_v15, %v57_v13 }
  0x2a   :  { %v51_v18 = vrot.slane %v50_v16, 1  ;;  %v60_v19 = vrot.slane %v59_v17, 1 }
  0x2c   :  { %v52_v20 = vadd.f32 %v51_v18, %v50_v16  ;;  %v61_v21 = vadd.f32 %v60_v19, %v59_v17 }
  0x2e   :  { %v63_v22 = vsel %vm62_vm0, %v52_v20, %v61_v21 }
  0x2f   :  { %v65_v23 = vsel %vm64_vm1, %v63_v22, 0.0 }
  0x30   :  { %66 = vst [vmem:[#allocation7] sm:$0xff] %v65_v23 }
  0x31   :  { %139 = shalt.err (!%p136_p0)
}
  0x32   :  { %76 = dma.vmem_to_hbm [thread:$0]  %s74_s1, 128, %s185_s2, [#allocation4]  }
  0x33   :  { %152 = dma.done.wait [#allocation4], 128  }
  0x34   :  { %153 = vsyncadd [#allocation4], 4294967168 }
  0x35   :  { %80 = vsyncpa [#allocation3], 1 }
  0x36   :  { %81 = vsyncpa [#allocation6], 1 }
  0x37   :  { %82 = vsyncpa [#allocation4], 1 }

</bundles_post_ra>
